<compile_context>
chip_gen: v7x
topology: tpu7x:2x2x1
jax: 0.10.0
libtpu: 0.0.40
codegen_flags: <defaults>
</compile_context>

<pallas_src>
import numpy as np
import jax
import jax.numpy as jnp
from jax.experimental import pallas as pl
from jax.experimental.pallas import tpu as pltpu

DIM = 2        # Finn(dim=2)
HIDDEN = 32    # IntegralNetwork hidden width (nlayers=2, k=1)
AREA = 1.0     # Finn(area=1.0, condition=True)
BATCH = 8


def _tanh_deriv_poly_coeffs(n):
    # tanh^{(n)}(u) = P_n(tanh(u)); P_0(t) = t, P_{k+1}(t) = P_k'(t) * (1 - t^2)
    c = [0.0, 1.0]
    for _ in range(n):
        d = [c[k] * k for k in range(1, len(c))]
        new = [0.0] * (len(d) + 2)
        for k, v in enumerate(d):
            new[k] += v
            new[k + 2] -= v
        c = new
    return c


def get_eval_points_np(x_lim_lower, x_lim_upper):
    # mirrors Finn.get_eval_points for finite lower/upper limits
    n = 2 ** DIM
    pts = np.zeros((n, DIM), np.float64)
    sign = np.ones((n,), np.float64)
    for i in range(DIM):
        xi_lim = np.array([x_lim_lower[i], x_lim_upper[i]], np.float64)
        rep_len = 2 ** i
        rep_int_len = n // 2 // rep_len
        pts[:, i] = np.tile(np.repeat(xi_lim, rep_int_len), rep_len)
        sign *= np.tile(np.repeat(np.array([-1.0, 1.0]), rep_int_len), rep_len)
    return pts, sign


# Fixed integration box [-1, 1]^DIM (Finn default). Corners and signs are
# compile-time constants baked into the kernel (no pts/sign operands).
_X_LIM_LOWER = -np.ones(DIM)
_X_LIM_UPPER = np.ones(DIM)
_PTS, _SIGN = get_eval_points_np(_X_LIM_LOWER, _X_LIM_UPPER)


def finn_kernel(x_ref, p_ref, out_ref):
    """Single-call Finn forward.

    x_ref:   (B, DIM)    inputs: batch on sublanes, feature on lanes
    p_ref:   (DIM+2, H)  packed params: rows 0..DIM-1 = W1 columns,
                         row DIM = b1, row DIM+1 = w2
    out_ref: (B, 1)      mixed partial of F, scaled by AREA / calc_area()
    """
    x = x_ref[...]                                      # (B, DIM)
    w1_rows = [p_ref[i:i + 1, :] for i in range(DIM)]   # each (1, H) = W1[:, i]
    b1 = p_ref[DIM:DIM + 1, :]                          # (1, H)
    w2 = p_ref[DIM + 1:DIM + 2, :]                      # (1, H)

    # --- calc_area(): signed corner evaluations of F over the box -----------
    # (signs sum to zero, so the output bias b2 cancels and is never needed)
    acc = None
    for c in range(2 ** DIM):
        zc = b1
        for i in range(DIM):
            zc = zc + float(_PTS[c, i]) * w1_rows[i]     # (1, H), VPU FMAs
        term = float(_SIGN[c]) * jnp.tanh(zc)            # EUP
        acc = term if acc is None else acc + term
    actual_area = jnp.sum(w2 * acc, axis=-1, keepdims=True)   # (1, 1)

    # coef[h] = (AREA / area) * w2[h] * prod_i W1[h, i]  (scale folded in)
    coef = (AREA / actual_area) * w2
    for i in range(DIM):
        coef = coef * w1_rows[i]                         # (1, H)

    # --- d^DIM F / dx_0 .. dx_{DIM-1} ----------------------------------------
    # z[b, h] = W1[h, :] . x[b, :] + b1[h] -- K=DIM unrolled VPU FMAs, no MXU.
    z = b1
    for i in range(DIM):
        z = z + x[:, i:i + 1] * w1_rows[i]               # (B, H)
    t = jnp.tanh(z)                                      # EUP
    if DIM == 2:
        pn = 2.0 * t * (t * t - 1.0)                     # exact tanh''(z)
    else:
        coeffs = _tanh_deriv_poly_coeffs(DIM)            # generic Horner fallback
        pn = jnp.full_like(t, coeffs[-1])
        for cc in reversed(coeffs[:-1]):
            pn = pn * t + cc

    # f(x_b) * scale = sum_h coef[h] * P_DIM(tanh(z[b, h]))  -> single (B, 1) store
    out_ref[...] = jnp.sum(pn * coef, axis=-1, keepdims=True)


def build_params(key):
    k1, k2, k3, k4 = jax.random.split(key, 4)
    lim1 = 1.0 / np.sqrt(DIM)
    w1 = jax.random.uniform(k1, (HIDDEN, DIM), jnp.float32, -lim1, lim1)
    b1 = jax.random.uniform(k2, (HIDDEN,), jnp.float32, -lim1, lim1)
    lim2 = 1.0 / np.sqrt(HIDDEN)
    w2 = jax.random.uniform(k3, (1, HIDDEN), jnp.float32, -lim2, lim2)
    b2 = jax.random.uniform(k4, (1,), jnp.float32, -lim2, lim2)
    return w1, b1, w2, b2


@jax.jit
def finn_forward(x, w1, b1, w2, b2):
    B = x.shape[0]
    # Pack all per-hidden-unit parameters into one (DIM+2, H) lane-dense operand:
    # one DMA instead of three/four tiny ones. b2 is unused (see kernel note).
    packed = jnp.concatenate(
        [w1.T, b1.reshape(1, HIDDEN), w2.reshape(1, HIDDEN)], axis=0
    ).astype(jnp.float32)                                # (DIM+2, H)

    out = pl.pallas_call(
        finn_kernel,
        out_shape=jax.ShapeDtypeStruct((B, 1), jnp.float32),
        in_specs=[
            pl.BlockSpec(memory_space=pltpu.MemorySpace.VMEM),   # x (B, DIM)
            pl.BlockSpec(memory_space=pltpu.MemorySpace.VMEM),   # packed params
        ],
        out_specs=pl.BlockSpec(memory_space=pltpu.MemorySpace.VMEM),
    )(x.astype(jnp.float32), packed)
    return out[:, 0]   # matches torch output shape x.shape[:-1]


def reference_forward(x, w1, b1, w2, b2):
    # pure-JAX reference using nested autodiff (mirrors Finn.differentiate)
    pts = jnp.asarray(_PTS, jnp.float32)
    sign = jnp.asarray(_SIGN, jnp.float32)

    def F_single(xv):
        return jnp.tanh(w1 @ xv + b1) @ w2[0] + b2[0]

    d = F_single
    for i in range(DIM):
        d = (lambda g, i: (lambda xv: jax.grad(g)(xv)[i]))(d, i)
    dyi = jax.vmap(d)(x)
    fe = jax.vmap(F_single)(pts)
    actual_area = jnp.sum(fe * sign)
    # NOTE: like the PyTorch module, this divides by a signed corner sum that
    # could be near zero for unlucky weight draws (no guard, by design).
    return dyi * (AREA / actual_area)


if __name__ == "__main__":
    key = jax.random.PRNGKey(0)
    kx, kp = jax.random.split(key)
    x = jax.random.normal(kx, (BATCH, DIM), jnp.float32)
    w1, b1, w2, b2 = build_params(kp)

    out = finn_forward(x, w1, b1, w2, b2)
    out = jax.block_until_ready(out)

    ref = reference_forward(x, w1, b1, w2, b2)
    np.testing.assert_allclose(np.asarray(out), np.asarray(ref), rtol=1e-3, atol=1e-4)

    print("KERNEL_OK")
</pallas_src>

<mosaic_0001>
module attributes {stable_mosaic.version = 11 : i64} {
  func.func @finn_kernel(%arg0: memref<8x2xf32, #tpu.memory_space<vmem>>, %arg1: memref<4x32xf32, #tpu.memory_space<vmem>>, %arg2: memref<8x1xf32, #tpu.memory_space<vmem>>) attributes {dimension_semantics = [], scalar_prefetch = 0 : i64, scratch_operands = 0 : i64, tpu.core_type = #tpu.core_type<tc>} {
    %c0 = arith.constant 0 : index
    %c0_0 = arith.constant 0 : index
    %0 = vector.load %arg0[%c0, %c0_0] : memref<8x2xf32, #tpu.memory_space<vmem>>, vector<8x2xf32>
    %c0_1 = arith.constant 0 : index
    %c0_2 = arith.constant 0 : index
    %1 = vector.load %arg1[%c0_1, %c0_2] : memref<4x32xf32, #tpu.memory_space<vmem>>, vector<1x32xf32>
    %c1 = arith.constant 1 : index
    %c0_3 = arith.constant 0 : index
    %2 = vector.load %arg1[%c1, %c0_3] : memref<4x32xf32, #tpu.memory_space<vmem>>, vector<1x32xf32>
    %c2 = arith.constant 2 : index
    %c0_4 = arith.constant 0 : index
    %3 = vector.load %arg1[%c2, %c0_4] : memref<4x32xf32, #tpu.memory_space<vmem>>, vector<1x32xf32>
    %c3 = arith.constant 3 : index
    %c0_5 = arith.constant 0 : index
    %4 = vector.load %arg1[%c3, %c0_5] : memref<4x32xf32, #tpu.memory_space<vmem>>, vector<1x32xf32>
    %cst = arith.constant -1.000000e+00 : f32
    %5 = vector.broadcast %cst : f32 to vector<1x32xf32>
    %6 = arith.mulf %5, %1 : vector<1x32xf32>
    %7 = arith.addf %3, %6 : vector<1x32xf32>
    %cst_6 = arith.constant -1.000000e+00 : f32
    %8 = vector.broadcast %cst_6 : f32 to vector<1x32xf32>
    %9 = arith.mulf %8, %2 : vector<1x32xf32>
    %10 = arith.addf %7, %9 : vector<1x32xf32>
    %11 = math.tanh %10 : vector<1x32xf32>
    %cst_7 = arith.constant 1.000000e+00 : f32
    %12 = vector.broadcast %cst_7 : f32 to vector<1x32xf32>
    %13 = arith.mulf %12, %11 : vector<1x32xf32>
    %cst_8 = arith.constant -1.000000e+00 : f32
    %14 = vector.broadcast %cst_8 : f32 to vector<1x32xf32>
    %15 = arith.mulf %14, %1 : vector<1x32xf32>
    %16 = arith.addf %3, %15 : vector<1x32xf32>
    %cst_9 = arith.constant 1.000000e+00 : f32
    %17 = vector.broadcast %cst_9 : f32 to vector<1x32xf32>
    %18 = arith.mulf %17, %2 : vector<1x32xf32>
    %19 = arith.addf %16, %18 : vector<1x32xf32>
    %20 = math.tanh %19 : vector<1x32xf32>
    %cst_10 = arith.constant -1.000000e+00 : f32
    %21 = vector.broadcast %cst_10 : f32 to vector<1x32xf32>
    %22 = arith.mulf %21, %20 : vector<1x32xf32>
    %23 = arith.addf %13, %22 : vector<1x32xf32>
    %cst_11 = arith.constant 1.000000e+00 : f32
    %24 = vector.broadcast %cst_11 : f32 to vector<1x32xf32>
    %25 = arith.mulf %24, %1 : vector<1x32xf32>
    %26 = arith.addf %3, %25 : vector<1x32xf32>
    %cst_12 = arith.constant -1.000000e+00 : f32
    %27 = vector.broadcast %cst_12 : f32 to vector<1x32xf32>
    %28 = arith.mulf %27, %2 : vector<1x32xf32>
    %29 = arith.addf %26, %28 : vector<1x32xf32>
    %30 = math.tanh %29 : vector<1x32xf32>
    %cst_13 = arith.constant -1.000000e+00 : f32
    %31 = vector.broadcast %cst_13 : f32 to vector<1x32xf32>
    %32 = arith.mulf %31, %30 : vector<1x32xf32>
    %33 = arith.addf %23, %32 : vector<1x32xf32>
    %cst_14 = arith.constant 1.000000e+00 : f32
    %34 = vector.broadcast %cst_14 : f32 to vector<1x32xf32>
    %35 = arith.mulf %34, %1 : vector<1x32xf32>
    %36 = arith.addf %3, %35 : vector<1x32xf32>
    %cst_15 = arith.constant 1.000000e+00 : f32
    %37 = vector.broadcast %cst_15 : f32 to vector<1x32xf32>
    %38 = arith.mulf %37, %2 : vector<1x32xf32>
    %39 = arith.addf %36, %38 : vector<1x32xf32>
    %40 = math.tanh %39 : vector<1x32xf32>
    %cst_16 = arith.constant 1.000000e+00 : f32
    %41 = vector.broadcast %cst_16 : f32 to vector<1x32xf32>
    %42 = arith.mulf %41, %40 : vector<1x32xf32>
    %43 = arith.addf %33, %42 : vector<1x32xf32>
    %44 = arith.mulf %4, %43 : vector<1x32xf32>
    %cst_17 = arith.constant dense<0.000000e+00> : vector<1xf32>
    %45 = vector.multi_reduction <add>, %44, %cst_17 [1] : vector<1x32xf32> to vector<1xf32>
    %46 = vector.shape_cast %45 : vector<1xf32> to vector<1x1xf32>
    %cst_18 = arith.constant 1.000000e+00 : f32
    %47 = vector.broadcast %cst_18 : f32 to vector<1x1xf32>
    %48 = arith.divf %47, %46 : vector<1x1xf32>
    %49 = vector.broadcast %48 : vector<1x1xf32> to vector<1x32xf32>
    %50 = arith.mulf %49, %4 : vector<1x32xf32>
    %51 = arith.mulf %50, %1 : vector<1x32xf32>
    %52 = arith.mulf %51, %2 : vector<1x32xf32>
    %53 = vector.extract_strided_slice %0 {offsets = [0, 0], sizes = [8, 1], strides = [1, 1]} : vector<8x2xf32> to vector<8x1xf32>
    %54 = vector.broadcast %53 : vector<8x1xf32> to vector<8x32xf32>
    %55 = vector.broadcast %1 : vector<1x32xf32> to vector<8x32xf32>
    %56 = arith.mulf %54, %55 : vector<8x32xf32>
    %57 = vector.broadcast %3 : vector<1x32xf32> to vector<8x32xf32>
    %58 = arith.addf %57, %56 : vector<8x32xf32>
    %59 = vector.extract_strided_slice %0 {offsets = [0, 1], sizes = [8, 1], strides = [1, 1]} : vector<8x2xf32> to vector<8x1xf32>
    %60 = vector.broadcast %59 : vector<8x1xf32> to vector<8x32xf32>
    %61 = vector.broadcast %2 : vector<1x32xf32> to vector<8x32xf32>
    %62 = arith.mulf %60, %61 : vector<8x32xf32>
    %63 = arith.addf %58, %62 : vector<8x32xf32>
    %64 = math.tanh %63 : vector<8x32xf32>
    %cst_19 = arith.constant 2.000000e+00 : f32
    %65 = vector.broadcast %cst_19 : f32 to vector<8x32xf32>
    %66 = arith.mulf %65, %64 : vector<8x32xf32>
    %67 = arith.mulf %64, %64 : vector<8x32xf32>
    %cst_20 = arith.constant 1.000000e+00 : f32
    %68 = vector.broadcast %cst_20 : f32 to vector<8x32xf32>
    %69 = arith.subf %67, %68 : vector<8x32xf32>
    %70 = arith.mulf %66, %69 : vector<8x32xf32>
    %71 = vector.broadcast %52 : vector<1x32xf32> to vector<8x32xf32>
    %72 = arith.mulf %70, %71 : vector<8x32xf32>
    %cst_21 = arith.constant dense<0.000000e+00> : vector<8xf32>
    %73 = vector.multi_reduction <add>, %72, %cst_21 [1] : vector<8x32xf32> to vector<8xf32>
    %74 = vector.shape_cast %73 : vector<8xf32> to vector<8x1xf32>
    %c0_22 = arith.constant 0 : index
    %c0_23 = arith.constant 0 : index
    %75 = vector.load %arg2[%c0_22, %c0_23] : memref<8x1xf32, #tpu.memory_space<vmem>>, vector<8x1xf32>
    tpu.vector_store %arg2[%c0_22, %c0_23], %74 {strides = array<i32>} : memref<8x1xf32, #tpu.memory_space<vmem>>, vector<8x1xf32>,
    return
  }
}

</mosaic_0001>

<bundles_post_ra>
// kernel: finn_forward.1
= control target key start
LH: loop header
LB: loop body
LE: loop exit
PB: predicated region body
PF: predicated region fallthrough
CT: control target
= control target key end

     0   :  { %v106_v3 = vmov 0   ;;  %v107_v4 = vmov 1   ;;  %vm34_vm0 = vcmask 253952   ;;  %v48_v26 = vlaneseq  ;;  %s141_s1 = inlined_call_operand.vmem [shape: f32[4,32], index: 1, kind: input, shape index: {}]   ;;  %s142_s0 = inlined_call_operand.vmem [shape: f32[8,2], index: 0, kind: input, shape index: {}]   ;;  %s143_s2 = inlined_call_operand.vmem [shape: f32[8,1], index: 2, kind: output, shape index: {}]  }
   0x1   :  { %v12_v0 = vld [vmem:[%s141_s1] sm:$0x1]  ;;  %v13_v1 = vld [vmem:[%s141_s1 + $0x1] sm:$0x1]  ;;  %v14_v2 = vld [vmem:[%s141_s1 + $0x2] sm:$0x1]  ;;  %91 = vset.pattern.permute.xlu0 %v106_v3  ;;  %92 = vset.pattern.permute.xlu1 %v107_v4 }
   0x2   :  { %v16_v5 = vmul.f32 -1.0, %v12_v0  ;;  %v18_v6 = vmul.f32 -1.0, %v13_v1  ;;  %v25_v7 = vadd.f32 %v14_v2, %v12_v0  ;;  %v11_v8 = vld [vmem:[%s142_s0] sm:$0xff]  ;;  %v49_v27 = vshrl.u32 %v48_v26, 7 }
   0x3   :  { %59 = vperm.xlu1 %92, %v11_v8   ;;  %v15_v22 = vld [vmem:[%s141_s1 + $0x3] sm:$0x1]  ;;  %vm78_vm1 = vcmask 261120   ;;  %vm82_vm2 = vcmask 7168  }
   0x4   :  { %v17_v9 = vadd.f32 %v16_v5, %v14_v2  ;;  %v26_v10 = vadd.f32 %v25_v7, %v18_v6  ;;  %v30_v13 = vadd.f32 %v25_v7, %v13_v1  ;;  %v50_v28 = vsub.s32 0, %v49_v27 }
   0x6   :  { %v19_v11 = vadd.f32 %v18_v6, %v17_v9  ;;  %v21_v12 = vadd.f32 %v17_v9, %v13_v1  ;;  %94 = vtanh.f32 %v26_v10  ;;  %v51_v30 = vrot.slane %v12_v0, %v50_v28 }
   0x7   :  { %v65_v31 = vrot.slane %v13_v1, %v50_v28  ;;  %v56_v33 = vrot.slane %v14_v2, %v50_v28 }
   0x8   :  { %96 = vtanh.f32 %v19_v11 }
   0x9   :  { %98 = vtanh.f32 %v21_v12 }
   0xa   :  { %100 = vtanh.f32 %v30_v13 }
  0x10   :  { %v95_v14 = vpop.eup %94 }
  0x11   :  { %v28_v18 = vmul.f32 -1.0, %v95_v14 }
  0x12   :  { %v97_v15 = vpop.eup %96 }
  0x13   :  { %v99_v16 = vpop.eup %98 }
  0x14   :  { %v23_v17 = vmul.f32 -1.0, %v99_v16  ;;  %v101_v20 = vpop.eup %100 }
  0x16   :  { %v24_v19 = vadd.f32 %v97_v15, %v23_v17 }
  0x18   :  { %v29_v21 = vadd.f32 %v28_v18, %v24_v19 }
  0x1a   :  { %v32_v23 = vadd.f32 %v101_v20, %v29_v21 }
  0x1c   :  { %v33_v24 = vmul.f32 %v32_v23, %v15_v22 }
  0x1e   :  { %v35_v25 = vsel %vm34_vm0, %v33_v24, 0.0 }
  0x1f   :  { %36 = vadd.xlane.f32.xlu0 %v35_v25 }
  0x35   :  { %45 = vperm.xlu0 %91, %v11_v8  }
  0x39   :  { %93 = vset.pattern.permute.xlu0 %v107_v4 }
  0x82   :  { %v60_v32 = vpop.permute.xlu1 %59 }
  0x83   :  { %v66_v36 = vmul.f32 %v65_v31, %v60_v32 }
  0xac   :  { %v37_v29 = vpop.xlane.xlu0 %36 }
  0xad   :  { %102 = vrcp.f32 %v37_v29 }
  0xb4   :  { %v46_v34 = vpop.permute.xlu0 %45 }
  0xb5   :  { %v52_v35 = vmul.f32 %v51_v30, %v46_v34 }
  0xb7   :  { %v57_v37 = vadd.f32 %v56_v33, %v52_v35  ;;  %v103_v39 = vpop.eup %102 }
  0xb8   :  { %v40_v40 = vmul.f32 %v103_v39, %v15_v22 }
  0xb9   :  { %v67_v38 = vadd.f32 %v66_v36, %v57_v37 }
  0xba   :  { %v41_v41 = vmul.f32 %v40_v40, %v12_v0 }
  0xbb   :  { %104 = vtanh.f32 %v67_v38 }
  0xbc   :  { %v42_v43 = vmul.f32 %v41_v41, %v13_v1 }
  0xbe   :  { %v76_v48 = vrot.slane %v42_v43, %v50_v28 }
  0xc5   :  { %v105_v42 = vpop.eup %104 }
  0xc6   :  { %v70_v44 = vmul.f32 %v105_v42, %v105_v42  ;;  %v69_v45 = vmul.f32 2.0, %v105_v42 }
  0xc8   :  { %v88_v46 = vadd.f32 -1.0, %v70_v44 }
  0xca   :  { %v72_v47 = vmul.f32 %v88_v46, %v69_v45 }
  0xcc   :  { %v77_v49 = vmul.f32 %v76_v48, %v72_v47 }
  0xce   :  { %v79_v50 = vsel %vm78_vm1, %v77_v49, 0.0 }
  0xcf   :  { %80 = vadd.xlane.f32.xlu1 %v79_v50 }
 0x15c   :  { %v81_v51 = vpop.xlane.xlu1 %80 }
 0x15d   :  { %83 = vst.msk [vmem:[%s143_s2] sm:$0xff] %vm82_vm2, %v81_v51 }

</bundles_post_ra>
